<compile_context>
chip_gen: v5e
topology: v5e:2x2
jax: 0.10.0
libtpu: 0.0.40
codegen_flags: <defaults>
</compile_context>

<pallas_src>
import functools

import jax
import jax.numpy as jnp
from jax.experimental import pallas as pl
from jax.experimental.pallas import tpu as pltpu

LANE = 128          # vreg lane width
BLK_R_MAX = 1024    # rows per block (1024*128*4B = 512 KiB per input block)
PAD_LOGIT = -1.0e4  # exp(-1e4) == 0 exactly in f32 -> padded elems contribute 0


def _round_up(a, b):
    return (a + b - 1) // b * b


def _dice_bce_kernel(x_ref, t_ref, out_ref, acc_ref, *, n_valid, smooth):
    """Accumulates sum(BCE), sum(sig*t), sum(sig + t) as (8,128) vector partials,
    then emits the scalar Dice+BCE loss in the last-step epilogue."""
    i = pl.program_id(0)

    @pl.when(i == 0)
    def _():
        acc_ref[...] = jnp.zeros_like(acc_ref)

    x = x_ref[...].astype(jnp.float32)
    t = t_ref[...].astype(jnp.float32)

    # Numerically-stable BCE-with-logits (same as PyTorch):
    #   max(x, 0) - x*t + log1p(exp(-|x|))
    # Sigmoid derived from the same exp -> 2 EUP transcendentals per element.
    e = jnp.exp(-jnp.abs(x))
    bce = jnp.maximum(x, 0.0) - x * t + jnp.log1p(e)
    sig = jnp.where(x >= 0.0, 1.0, e) / (1.0 + e)

    blk_r = x.shape[0]
    k = blk_r // 8
    # VPU-only accumulation into (8,128) vregs; cross-lane reduce deferred.
    acc_ref[0] += jnp.sum(bce.reshape(k, 8, LANE), axis=0)
    acc_ref[1] += jnp.sum((sig * t).reshape(k, 8, LANE), axis=0)
    acc_ref[2] += jnp.sum((sig + t).reshape(k, 8, LANE), axis=0)

    @pl.when(i == pl.num_programs(0) - 1)
    def _():
        bce_sum = jnp.sum(acc_ref[0])
        inter = jnp.sum(acc_ref[1])
        denom = jnp.sum(acc_ref[2])
        dice = 1.0 - (2.0 * inter + smooth) / (denom + smooth)
        out_ref[0] = bce_sum / n_valid + dice


def dice_bce_loss(inputs, targets, smooth=1.0):
    """DiceBCELoss.forward: mean BCE-with-logits + soft Dice loss (scalar)."""
    n = inputs.size
    if n == 0:
        # PyTorch: mean over empty tensor -> nan (dice term would be 0).
        return jnp.float32(jnp.nan)

    x = inputs.reshape(-1)
    t = targets.reshape(-1)

    rows = pl.cdiv(n, LANE)
    blk_r = min(BLK_R_MAX, _round_up(rows, 8))       # block rows, multiple of 8
    padded_rows = _round_up(rows, blk_r)
    padded = padded_rows * LANE

    if padded != n:
        # Sentinel padding: BCE, sigmoid and target contributions are exactly 0,
        # so no in-kernel masking is needed. Only materialized when the flat
        # size is not already a whole number of blocks.
        x = jnp.pad(x, (0, padded - n), constant_values=PAD_LOGIT)
        t = jnp.pad(t, (0, padded - n))
    x = x.reshape(padded_rows, LANE)
    t = t.reshape(padded_rows, LANE)

    kernel = functools.partial(
        _dice_bce_kernel, n_valid=float(n), smooth=float(smooth))
    out = pl.pallas_call(
        kernel,
        out_shape=jax.ShapeDtypeStruct((1,), jnp.float32),
        grid_spec=pltpu.PrefetchScalarGridSpec(
            num_scalar_prefetch=0,
            grid=(padded_rows // blk_r,),
            in_specs=[
                pl.BlockSpec((blk_r, LANE), lambda i: (i, 0)),
                pl.BlockSpec((blk_r, LANE), lambda i: (i, 0)),
            ],
            out_specs=pl.BlockSpec(memory_space=pltpu.SMEM),
            scratch_shapes=[pltpu.VMEM((3, 8, LANE), jnp.float32)],
        ),
        compiler_params=pltpu.CompilerParams(
            dimension_semantics=("arbitrary",)),
    )(x, t)
    return out[0]


def _reference(inputs, targets, smooth=1.0):
    x = inputs.reshape(-1).astype(jnp.float32)
    t = targets.reshape(-1).astype(jnp.float32)
    bce = jnp.mean(jnp.maximum(x, 0.0) - x * t + jnp.log1p(jnp.exp(-jnp.abs(x))))
    s = jax.nn.sigmoid(x)
    inter = jnp.sum(s * t)
    dice = 1.0 - (2.0 * inter + smooth) / (jnp.sum(s) + jnp.sum(t) + smooth)
    return bce + dice


if __name__ == "__main__":
    key = jax.random.PRNGKey(0)
    k1, k2, k3, k4 = jax.random.split(key, 4)

    # NCHW, same convention as the PyTorch module (block-aligned -> no pad path).
    inputs = jax.random.normal(k1, (2, 4, 16, 16), dtype=jnp.float32)        # logits
    targets = (jax.random.uniform(k2, (2, 4, 16, 16)) > 0.5).astype(jnp.float32)

    loss = dice_bce_loss(inputs, targets, smooth=1.0)
    jax.block_until_ready(loss)
    ref = _reference(inputs, targets, smooth=1.0)
    assert jnp.allclose(loss, ref, atol=1e-5, rtol=1e-5), (loss, ref)

    # Non-aligned shape exercises the sentinel-padded tail path.
    inputs2 = jax.random.normal(k3, (2, 3, 15, 17), dtype=jnp.float32)
    targets2 = (jax.random.uniform(k4, (2, 3, 15, 17)) > 0.5).astype(jnp.float32)

    loss2 = dice_bce_loss(inputs2, targets2, smooth=1.0)
    jax.block_until_ready(loss2)
    ref2 = _reference(inputs2, targets2, smooth=1.0)
    assert jnp.allclose(loss2, ref2, atol=1e-5, rtol=1e-5), (loss2, ref2)

    print("KERNEL_OK")
</pallas_src>

<mosaic_0001>
module attributes {stable_mosaic.version = 11 : i64} {
  func.func @_dice_bce_kernel(%arg0: i32, %arg1: memref<16x128xf32, #tpu.memory_space<vmem>>, %arg2: memref<16x128xf32, #tpu.memory_space<vmem>>, %arg3: memref<1xf32, #tpu.memory_space<smem>>, %arg4: memref<3x8x128xf32, #tpu.memory_space<vmem>>) attributes {dimension_semantics = [#tpu.dimension_semantics<arbitrary>], iteration_bounds = array<i64: 1>, scalar_prefetch = 0 : i64, scratch_operands = 1 : i64, tpu.core_type = #tpu.core_type<tc>, window_params = [{transform_indices = @transform_0, window_bounds = array<i64: 16, 128>}, {transform_indices = @transform_1, window_bounds = array<i64: 16, 128>}, {transform_indices = @transform_2, window_bounds = array<i64: 1>}]} {
    %c0_i32 = arith.constant 0 : i32
    %0 = arith.cmpi eq, %arg0, %c0_i32 : i32
    %1 = arith.extui %0 : i1 to i32
    %c0_i32_0 = arith.constant 0 : i32
    %2 = arith.cmpi ne, %1, %c0_i32_0 : i32
    scf.if %2 {
      %cst_29 = arith.constant 0.000000e+00 : f32
      %51 = vector.broadcast %cst_29 : f32 to vector<3x8x128xf32>
      %c0_30 = arith.constant 0 : index
      %c0_31 = arith.constant 0 : index
      %c0_32 = arith.constant 0 : index
      %52 = vector.load %arg4[%c0_30, %c0_31, %c0_32] : memref<3x8x128xf32, #tpu.memory_space<vmem>>, vector<3x8x128xf32>
      tpu.vector_store %arg4[%c0_30, %c0_31, %c0_32], %51 {strides = array<i32>} : memref<3x8x128xf32, #tpu.memory_space<vmem>>, vector<3x8x128xf32>,
    } else {
    }
    %c0 = arith.constant 0 : index
    %c0_1 = arith.constant 0 : index
    %3 = vector.load %arg1[%c0, %c0_1] : memref<16x128xf32, #tpu.memory_space<vmem>>, vector<16x128xf32>
    %c0_2 = arith.constant 0 : index
    %c0_3 = arith.constant 0 : index
    %4 = vector.load %arg2[%c0_2, %c0_3] : memref<16x128xf32, #tpu.memory_space<vmem>>, vector<16x128xf32>
    %5 = math.absf %3 : vector<16x128xf32>
    %cst = arith.constant 0.000000e+00 : f32
    %6 = vector.broadcast %cst : f32 to vector<16x128xf32>
    %7 = arith.subf %6, %5 : vector<16x128xf32>
    %8 = math.exp %7 : vector<16x128xf32>
    %cst_4 = arith.constant 0.000000e+00 : f32
    %9 = vector.broadcast %cst_4 : f32 to vector<16x128xf32>
    %10 = arith.maximumf %3, %9 : vector<16x128xf32>
    %11 = arith.mulf %3, %4 : vector<16x128xf32>
    %12 = arith.subf %10, %11 : vector<16x128xf32>
    %13 = math.log1p %8 : vector<16x128xf32>
    %14 = arith.addf %12, %13 : vector<16x128xf32>
    %cst_5 = arith.constant 0.000000e+00 : f32
    %15 = vector.broadcast %cst_5 : f32 to vector<16x128xf32>
    %16 = arith.cmpf oge, %3, %15 : vector<16x128xf32>
    %cst_6 = arith.constant 1.000000e+00 : f32
    %17 = vector.broadcast %cst_6 : f32 to vector<16x128xf32>
    %18 = arith.select %16, %17, %8 : vector<16x128xi1>, vector<16x128xf32>
    %cst_7 = arith.constant 1.000000e+00 : f32
    %19 = vector.broadcast %cst_7 : f32 to vector<16x128xf32>
    %20 = arith.addf %19, %8 : vector<16x128xf32>
    %21 = arith.divf %18, %20 : vector<16x128xf32>
    %c0_8 = arith.constant 0 : index
    %c0_9 = arith.constant 0 : index
    %c0_10 = arith.constant 0 : index
    %22 = vector.load %arg4[%c0_8, %c0_9, %c0_10] : memref<3x8x128xf32, #tpu.memory_space<vmem>>, vector<1x8x128xf32>
    %23 = vector.shape_cast %22 : vector<1x8x128xf32> to vector<8x128xf32>
    %24 = vector.shape_cast %14 : vector<16x128xf32> to vector<2x8x128xf32>
    %cst_11 = arith.constant dense<0.000000e+00> : vector<8x128xf32>
    %25 = vector.multi_reduction <add>, %24, %cst_11 [0] : vector<2x8x128xf32> to vector<8x128xf32>
    %26 = arith.addf %23, %25 : vector<8x128xf32>
    %c0_12 = arith.constant 0 : index
    %c0_13 = arith.constant 0 : index
    %c0_14 = arith.constant 0 : index
    %27 = vector.load %arg4[%c0_12, %c0_13, %c0_14] : memref<3x8x128xf32, #tpu.memory_space<vmem>>, vector<1x8x128xf32>
    %28 = vector.shape_cast %27 : vector<1x8x128xf32> to vector<8x128xf32>
    %29 = vector.shape_cast %26 : vector<8x128xf32> to vector<1x8x128xf32>
    tpu.vector_store %arg4[%c0_12, %c0_13, %c0_14], %29 {strides = array<i32>} : memref<3x8x128xf32, #tpu.memory_space<vmem>>, vector<1x8x128xf32>,
    %c1 = arith.constant 1 : index
    %c0_15 = arith.constant 0 : index
    %c0_16 = arith.constant 0 : index
    %30 = vector.load %arg4[%c1, %c0_15, %c0_16] : memref<3x8x128xf32, #tpu.memory_space<vmem>>, vector<1x8x128xf32>
    %31 = vector.shape_cast %30 : vector<1x8x128xf32> to vector<8x128xf32>
    %32 = arith.mulf %21, %4 : vector<16x128xf32>
    %33 = vector.shape_cast %32 : vector<16x128xf32> to vector<2x8x128xf32>
    %cst_17 = arith.constant dense<0.000000e+00> : vector<8x128xf32>
    %34 = vector.multi_reduction <add>, %33, %cst_17 [0] : vector<2x8x128xf32> to vector<8x128xf32>
    %35 = arith.addf %31, %34 : vector<8x128xf32>
    %c1_18 = arith.constant 1 : index
    %c0_19 = arith.constant 0 : index
    %c0_20 = arith.constant 0 : index
    %36 = vector.load %arg4[%c1_18, %c0_19, %c0_20] : memref<3x8x128xf32, #tpu.memory_space<vmem>>, vector<1x8x128xf32>
    %37 = vector.shape_cast %36 : vector<1x8x128xf32> to vector<8x128xf32>
    %38 = vector.shape_cast %35 : vector<8x128xf32> to vector<1x8x128xf32>
    tpu.vector_store %arg4[%c1_18, %c0_19, %c0_20], %38 {strides = array<i32>} : memref<3x8x128xf32, #tpu.memory_space<vmem>>, vector<1x8x128xf32>,
    %c2 = arith.constant 2 : index
    %c0_21 = arith.constant 0 : index
    %c0_22 = arith.constant 0 : index
    %39 = vector.load %arg4[%c2, %c0_21, %c0_22] : memref<3x8x128xf32, #tpu.memory_space<vmem>>, vector<1x8x128xf32>
    %40 = vector.shape_cast %39 : vector<1x8x128xf32> to vector<8x128xf32>
    %41 = arith.addf %21, %4 : vector<16x128xf32>
    %42 = vector.shape_cast %41 : vector<16x128xf32> to vector<2x8x128xf32>
    %cst_23 = arith.constant dense<0.000000e+00> : vector<8x128xf32>
    %43 = vector.multi_reduction <add>, %42, %cst_23 [0] : vector<2x8x128xf32> to vector<8x128xf32>
    %44 = arith.addf %40, %43 : vector<8x128xf32>
    %c2_24 = arith.constant 2 : index
    %c0_25 = arith.constant 0 : index
    %c0_26 = arith.constant 0 : index
    %45 = vector.load %arg4[%c2_24, %c0_25, %c0_26] : memref<3x8x128xf32, #tpu.memory_space<vmem>>, vector<1x8x128xf32>
    %46 = vector.shape_cast %45 : vector<1x8x128xf32> to vector<8x128xf32>
    %47 = vector.shape_cast %44 : vector<8x128xf32> to vector<1x8x128xf32>
    tpu.vector_store %arg4[%c2_24, %c0_25, %c0_26], %47 {strides = array<i32>} : memref<3x8x128xf32, #tpu.memory_space<vmem>>, vector<1x8x128xf32>,
    %c0_i32_27 = arith.constant 0 : i32
    %48 = arith.cmpi eq, %arg0, %c0_i32_27 : i32
    %49 = arith.extui %48 : i1 to i32
    %c0_i32_28 = arith.constant 0 : i32
    %50 = arith.cmpi ne, %49, %c0_i32_28 : i32
    scf.if %50 {
      %c0_29 = arith.constant 0 : index
      %c0_30 = arith.constant 0 : index
      %c0_31 = arith.constant 0 : index
      %51 = vector.load %arg4[%c0_29, %c0_30, %c0_31] : memref<3x8x128xf32, #tpu.memory_space<vmem>>, vector<1x8x128xf32>
      %52 = vector.shape_cast %51 : vector<1x8x128xf32> to vector<8x128xf32>
      %53 = vector.shape_cast %52 : vector<8x128xf32> to vector<1x8x128xf32>
      %cst_32 = arith.constant dense<0.000000e+00> : vector<1xf32>
      %54 = vector.multi_reduction <add>, %53, %cst_32 [1, 2] : vector<1x8x128xf32> to vector<1xf32>
      %55 = vector.shape_cast %54 : vector<1xf32> to vector<1x1x1xf32>
      %56 = vector.extract %55[0, 0, 0] : f32 from vector<1x1x1xf32>
      %c1_33 = arith.constant 1 : index
      %c0_34 = arith.constant 0 : index
      %c0_35 = arith.constant 0 : index
      %57 = vector.load %arg4[%c1_33, %c0_34, %c0_35] : memref<3x8x128xf32, #tpu.memory_space<vmem>>, vector<1x8x128xf32>
      %58 = vector.shape_cast %57 : vector<1x8x128xf32> to vector<8x128xf32>
      %59 = vector.shape_cast %58 : vector<8x128xf32> to vector<1x8x128xf32>
      %cst_36 = arith.constant dense<0.000000e+00> : vector<1xf32>
      %60 = vector.multi_reduction <add>, %59, %cst_36 [1, 2] : vector<1x8x128xf32> to vector<1xf32>
      %61 = vector.shape_cast %60 : vector<1xf32> to vector<1x1x1xf32>
      %62 = vector.extract %61[0, 0, 0] : f32 from vector<1x1x1xf32>
      %c2_37 = arith.constant 2 : index
      %c0_38 = arith.constant 0 : index
      %c0_39 = arith.constant 0 : index
      %63 = vector.load %arg4[%c2_37, %c0_38, %c0_39] : memref<3x8x128xf32, #tpu.memory_space<vmem>>, vector<1x8x128xf32>
      %64 = vector.shape_cast %63 : vector<1x8x128xf32> to vector<8x128xf32>
      %65 = vector.shape_cast %64 : vector<8x128xf32> to vector<1x8x128xf32>
      %cst_40 = arith.constant dense<0.000000e+00> : vector<1xf32>
      %66 = vector.multi_reduction <add>, %65, %cst_40 [1, 2] : vector<1x8x128xf32> to vector<1xf32>
      %67 = vector.shape_cast %66 : vector<1xf32> to vector<1x1x1xf32>
      %68 = vector.extract %67[0, 0, 0] : f32 from vector<1x1x1xf32>
      %cst_41 = arith.constant 2.000000e+00 : f32
      %69 = arith.mulf %cst_41, %62 : f32
      %cst_42 = arith.constant 1.000000e+00 : f32
      %70 = arith.addf %69, %cst_42 : f32
      %cst_43 = arith.constant 1.000000e+00 : f32
      %71 = arith.addf %68, %cst_43 : f32
      %72 = arith.divf %70, %71 : f32
      %cst_44 = arith.constant 1.000000e+00 : f32
      %73 = arith.subf %cst_44, %72 : f32
      %cst_45 = arith.constant 2.048000e+03 : f32
      %74 = arith.divf %56, %cst_45 : f32
      %75 = arith.addf %74, %73 : f32
      %c0_46 = arith.constant 0 : index
      %76 = memref.load %arg3[%c0_46] : memref<1xf32, #tpu.memory_space<smem>>
      memref.store %75, %arg3[%c0_46] : memref<1xf32, #tpu.memory_space<smem>>
    } else {
    }
    return
  }
  func.func @transform_0(%arg0: i32) -> (i32, i32) {
    %c0_i32 = arith.constant 0 : i32
    %c0_i32_0 = arith.constant 0 : i32
    return %arg0, %c0_i32 : i32, i32
  }
  func.func @transform_1(%arg0: i32) -> (i32, i32) {
    %c0_i32 = arith.constant 0 : i32
    %c0_i32_0 = arith.constant 0 : i32
    return %arg0, %c0_i32 : i32, i32
  }
  func.func @transform_2(%arg0: i32) -> i32 {
    %c0_i32 = arith.constant 0 : i32
    %c0_i32_0 = arith.constant 0 : i32
    return %c0_i32 : i32
  }
}

</mosaic_0001>

<bundles_post_ra>
// kernel: tpu_custom_call.1
= control target key start
LH: loop header
LB: loop body
LE: loop exit
PB: predicated region body
PF: predicated region fallthrough
CT: control target
= control target key end

     0   :  { %7 = vsyncpa [#allocation4], 0  ;;  %s383_s0 = inlined_call_operand.hbm [shape: f32[16,128], index: 0, kind: input, shape index: {}]   ;;  %s384_s1 = inlined_call_operand.hbm [shape: f32[16,128], index: 1, kind: input, shape index: {}]   ;;  %s385_s2 = inlined_call_operand.hbm [shape: f32[1], index: 2, kind: output, shape index: {}]  }
   0x1   :  { %8 = vsyncpa [#allocation7], 0 }
   0x2   :  { %9 = vsyncpa [#allocation5], 0  ;;  %s14_s11 = sshll.u32 %s383_s0, 4  ;;  %s324_s12 = smov [#allocation3]   ;;  %s15_s11 = int_to_ptr.hbm [resolvable:$true] %s14_s11 }
   0x3   :  { %s16_s13 = sshll.u32 %s324_s12, 4  ;;  %s27_s16 = sshll.u32 %s384_s1, 4  ;;  %s17_s13 = int_to_ptr.vmem [resolvable:$true] %s16_s13  ;;  %s28_s16 = int_to_ptr.hbm [resolvable:$true] %s27_s16 }
   0x4   :  { %s325_s17 = smov 128   ;;  %s326_s18 = smov 8  }
   0x5   :  { %22 = dma.hbm_to_vmem [thread:$0]  %s15_s11, 256, %s17_s13, [#allocation4], %s325_s17, %s325_s17, %s326_s18  }
   0x6   :  { %s327_s19 = smov [#allocation6]  }
   0x7   :  { %s29_s20 = sshll.u32 %s327_s19, 4  ;;  %s30_s20 = int_to_ptr.vmem [resolvable:$true] %s29_s20 }
   0x8   :  { %35 = dma.hbm_to_vmem [thread:$0]  %s28_s16, 256, %s30_s20, [#allocation7], %s325_s17, %s325_s17, %s326_s18  }
   0x9   :  { %318 = dma.done.wait [#allocation4], 256  }
   0xa   :  { %319 = vsyncadd [#allocation4], 4294967040 }
   0xb   :  { %320 = dma.done.wait [#allocation7], 256  }
   0xc   :  { %321 = vsyncadd [#allocation7], 4294967040  ;;  %v351_v0 = vld [vmem:[#allocation3] sm:$0xff]  ;;  %v353_v1 = vld [vmem:[#allocation3 + $0x8] sm:$0xff]  ;;  %s214_s30 = sshll.u32 %s385_s2, 4  ;;  %s329_s6 = smov [#allocation8]   ;;  %s215_s30 = int_to_ptr.hbm [resolvable:$true] %s214_s30 }
   0xd   :  { %v55_v2 = vand.u32 2147483647, %v351_v0  ;;  %v56_v3 = vand.u32 2147483647, %v353_v1  ;;  %v357_v12 = vld [vmem:[#allocation6] sm:$0xff]  ;;  %v359_v15 = vld [vmem:[#allocation6 + $0x8] sm:$0xff] }
   0xe   :  { %v63_v16 = vmax.f32 %v351_v0, 0.0  ;;  %v65_v18 = vmul.f32 %v357_v12, %v351_v0  ;;  %v64_v21 = vmax.f32 %v353_v1, 0.0  ;;  %v66_v22 = vmul.f32 %v359_v15, %v353_v1 }
   0xf   :  { %v57_v4 = vsub.f32 0.0, %v55_v2  ;;  %v58_v5 = vsub.f32 0.0, %v56_v3  ;;  %vm89_vm6 = vcmp.ge.f32.partialorder %v351_v0, 0.0  ;;  %vm90_vm7 = vcmp.ge.f32.partialorder %v353_v1, 0.0 }
  0x10   :  { %v67_v26 = vsub.f32 %v63_v16, %v65_v18  ;;  %v68_v29 = vsub.f32 %v64_v21, %v66_v22 }
  0x11   :  { %v59_v6 = vmul.f32 1.442695, %v57_v4  ;;  %v61_v7 = vmul.f32 1.442695, %v58_v5 }
  0x13   :  { %242 = vpow2.f32 %v59_v6 }
  0x14   :  { %244 = vpow2.f32 %v61_v7 }
  0x19   :  { %v243_v8 = vpop.eup %242 }
  0x1a   :  { %v245_v9 = vpop.eup %244  ;;  %v69_v10 = vadd.f32 1.0, %v243_v8  ;;  %v72_v11 = vmul.f32 -0.5, %v243_v8  ;;  %v75_v19 = vand.u32 2147483647, %v243_v8  ;;  %v91_v52 = vsel %vm89_vm6, 1.0, %v243_v8 }
  0x1b   :  { %v78_v13 = vadd.f32 1.0, %v245_v9  ;;  %v81_v14 = vmul.f32 -0.5, %v245_v9  ;;  %v84_v23 = vand.u32 2147483647, %v245_v9  ;;  %v92_v54 = vsel %vm90_vm7, 1.0, %v245_v9 }
  0x1c   :  { %246 = vlog2.f32 %v69_v10  ;;  %v73_v17 = vadd.f32 1.0, %v72_v11  ;;  %vm76_vm0 = vcmp.lt.f32.partialorder %v75_v19, 0.0004427343  ;;  %vm100_vm2 = vweird.f32 %v69_v10 }
  0x1d   :  { %248 = vlog2.f32 %v78_v13  ;;  %v82_v20 = vadd.f32 1.0, %v81_v14  ;;  %vm85_vm1 = vcmp.lt.f32.partialorder %v84_v23, 0.0004427343  ;;  %v104_v36 = vand.u32 2147483647, %v69_v10 }
  0x1e   :  { %250 = vrcp.f32 %v69_v10  ;;  %v74_v24 = vmul.f32 %v243_v8, %v73_v17  ;;  %v106_v39 = vand.u32 2147483648, %v69_v10  ;;  %v121_v43 = vand.u32 2147483648, %v78_v13 }
  0x1f   :  { %252 = vrcp.f32 %v78_v13  ;;  %v83_v27 = vmul.f32 %v245_v9, %v82_v20  ;;  %vm115_vm4 = vweird.f32 %v78_v13  ;;  %v119_v45 = vand.u32 2147483647, %v78_v13 }
  0x20   :  { %v107_v48 = vor.u32 1.1754944e-38, %v106_v39  ;;  %vm105_vm9 = vcmp.eq.f32.partialorder %v104_v36, 8.507059e+37  ;;  %v122_v51 = vor.u32 1.1754944e-38, %v121_v43 }
  0x21   :  { %vm120_vm11 = vcmp.eq.f32.partialorder %v119_v45, 8.507059e+37 }
  0x22   :  { %v247_v25 = vpop.eup %246 }
  0x23   :  { %v249_v28 = vpop.eup %248  ;;  %v71_v30 = vmul.f32 0.6931472, %v247_v25 }
  0x24   :  { %v251_v31 = vpop.eup %250  ;;  %v80_v32 = vmul.f32 0.6931472, %v249_v28 }
  0x25   :  { %v253_v33 = vpop.eup %252  ;;  %v77_v34 = vsel %vm76_vm0, %v74_v24, %v71_v30  ;;  %v96_v35 = vmul.f32 %v251_v31, %v69_v10  ;;  %vm101_vm3 = vweird.f32 %v251_v31  ;;  %v328_v24 = vmov 2048.0  }
  0x26   :  { %v86_v37 = vsel %vm85_vm1, %v83_v27, %v80_v32  ;;  %v87_v38 = vadd.f32 %v77_v34, %v67_v26  ;;  %v111_v40 = vmul.f32 %v253_v33, %v78_v13  ;;  %vm116_vm5 = vweird.f32 %v253_v33  ;;  %vm102_vm8 = vmor %vm100_vm2, %vm101_vm3 }
  0x27   :  { %v88_v41 = vadd.f32 %v86_v37, %v68_v29  ;;  %v97_v42 = vsub.f32 1.0, %v96_v35  ;;  %vm117_vm10 = vmor %vm115_vm4, %vm116_vm5  ;;  %254 = vrcp.f32 %v328_v24 }
  0x28   :  { %v112_v44 = vsub.f32 1.0, %v111_v40 }
  0x29   :  { %v126_v46 = vadd.f32 %v88_v41, %v87_v38  ;;  %v98_v47 = vmul.f32 %v251_v31, %v97_v42 }
  0x2a   :  { %v113_v49 = vmul.f32 %v253_v33, %v112_v44 }
  0x2b   :  { %147 = vadd.xlane.f32.xlu0 %v126_v46  ;;  %v99_v50 = vadd.f32 %v251_v31, %v98_v47 }
  0x2c   :  { %v114_v53 = vadd.f32 %v253_v33, %v113_v49 }
  0x2d   :  { %v103_v55 = vsel %vm102_vm8, %v251_v31, %v99_v50  ;;  %v255_v25 = vpop.eup %254 }
  0x2e   :  { %v108_v56 = vsel %vm105_vm9, %v107_v48, %v103_v55  ;;  %v118_v57 = vsel %vm117_vm10, %v253_v33, %v114_v53  ;;  %v198_v27 = vmul.f32 2048.0, %v255_v25  ;;  %vm202_vm13 = vweird.f32 %v255_v25 }
  0x2f   :  { %v109_v58 = vmul.f32 %v108_v56, %v91_v52  ;;  %v123_v59 = vsel %vm120_vm11, %v122_v51, %v118_v57 }
  0x30   :  { %v124_v60 = vmul.f32 %v123_v59, %v92_v54  ;;  %v199_v28 = vsub.f32 1.0, %v198_v27 }
  0x31   :  { %v138_v61 = vadd.f32 %v109_v58, %v357_v12  ;;  %v131_v62 = vmul.f32 %v109_v58, %v357_v12 }
  0x32   :  { %v139_v63 = vadd.f32 %v124_v60, %v359_v15  ;;  %v132_v0 = vmul.f32 %v124_v60, %v359_v15  ;;  %v200_v31 = vmul.f32 %v255_v25, %v199_v28 }
  0x34   :  { %v140_v1 = vadd.f32 %v139_v63, %v138_v61  ;;  %v133_v2 = vadd.f32 %v132_v0, %v131_v62  ;;  %v201_v36 = vadd.f32 %v255_v25, %v200_v31 }
  0x36   :  { %167 = vadd.xlane.f32.xlu1 %v140_v1  ;;  %157 = vadd.xlane.f32.xlu0 %v133_v2  ;;  %v203_v40 = vsel %vm202_vm13, %v255_v25, %v201_v36 }
  0x9e   :  { %v148_v3 = vpop.xlane.xlu0 %147 }
  0x9f   :  { %v149_v4 = vrot.slane %v148_v3, 4 }
  0xa1   :  { %v150_v5 = vadd.f32 %v149_v4, %v148_v3 }
  0xa3   :  { %v151_v6 = vrot.slane %v150_v5, 2 }
  0xa5   :  { %v152_v7 = vadd.f32 %v151_v6, %v150_v5 }
  0xa7   :  { %v153_v8 = vrot.slane %v152_v7, 1 }
  0xa9   :  { %v168_v9 = vpop.xlane.xlu1 %167  ;;  %v158_v10 = vpop.xlane.xlu0 %157  ;;  %v154_v11 = vadd.f32 %v153_v8, %v152_v7 }
  0xaa   :  { %v169_v13 = vrot.slane %v168_v9, 4  ;;  %v159_v14 = vrot.slane %v158_v10, 4 }
  0xab   :  { %226 = vpush %v154_v11 }
  0xac   :  { %v170_v12 = vadd.f32 %v169_v13, %v168_v9  ;;  %v160_v16 = vadd.f32 %v159_v14, %v158_v10 }
  0xae   :  { %v171_v17 = vrot.slane %v170_v12, 2  ;;  %v161_v15 = vrot.slane %v160_v16, 2 }
  0xb0   :  { %v172_v18 = vadd.f32 %v171_v17, %v170_v12  ;;  %v162_v19 = vadd.f32 %v161_v15, %v160_v16 }
  0xb2   :  { %v163_v20 = vrot.slane %v162_v19, 1  ;;  %v173_v21 = vrot.slane %v172_v18, 1 }
  0xb4   :  { %v164_v22 = vadd.f32 %v163_v20, %v162_v19  ;;  %v174_v23 = vadd.f32 %v173_v21, %v172_v18 }
  0xb6   :  { %228 = vpush %v164_v22 }
  0xb7   :  { %230 = vpush %v174_v23 }
  0xdc   :  { %s374_s0 = spop %226 }
  0xe7   :  { %s376_s1 = spop %228 }
  0xe8   :  { %s231_s21 = spop %230  ;;  %s176_s23 = smul.f32 2.0, %s376_s1 }
  0xe9   :  { %s178_s22 = sadd.f32 1.0, %s231_s21 }
  0xea   :  { %s177_s24 = sadd.f32 1.0, %s176_s23 }
  0xeb   :  { %v179_v26 = vstv %s178_s22 }
  0xec   :  { %256 = vrcp.f32 %v179_v26  ;;  %v191_v33 = vand.u32 2147483648, %v179_v26  ;;  %v189_v35 = vand.u32 2147483647, %v179_v26  ;;  %vm185_vm14 = vweird.f32 %v179_v26 }
  0xee   :  { %v192_v38 = vor.u32 1.1754944e-38, %v191_v33  ;;  %vm190_vm0 = vcmp.eq.f32.partialorder %v189_v35, 8.507059e+37 }
  0xf2   :  { %v257_v29 = vpop.eup %256 }
  0xf3   :  { %v181_v30 = vmul.f32 %v257_v29, %v179_v26  ;;  %vm186_vm12 = vweird.f32 %v257_v29 }
  0xf4   :  { %vm187_vm15 = vmor %vm185_vm14, %vm186_vm12 }
  0xf5   :  { %v182_v32 = vsub.f32 1.0, %v181_v30 }
  0xf7   :  { %v183_v34 = vmul.f32 %v257_v29, %v182_v32 }
  0xf9   :  { %v184_v37 = vadd.f32 %v257_v29, %v183_v34 }
  0xfb   :  { %v188_v39 = vsel %vm187_vm15, %v257_v29, %v184_v37 }
  0xfc   :  { %v193_v41 = vsel %vm190_vm0, %v192_v38, %v188_v39 }
  0xfd   :  { %232 = vpush %v193_v41 }
  0xfe   :  { %234 = vpush %v203_v40 }
 0x12e   :  { %s233_s25 = spop %232 }
 0x12f   :  { %s195_s26 = smul.f32 %s233_s25, %s177_s24  ;;  %s235_s27 = spop %234 }
 0x130   :  { %s205_s4 = smul.f32 %s235_s27, %s374_s0 }
 0x131   :  { %s196_s3 = ssub.f32 1.0, %s195_s26 }
 0x133   :  { %s206_s5 = sadd.f32 %s205_s4, %s196_s3 }
 0x135   :  { %208 = sst [smem:[#allocation8]] %s206_s5 }
 0x136   :  { %217 = dma.smem_to_hbm %s329_s6, 16, %s215_s30, [#allocation5]  }
 0x137   :  { %322 = dma.done.wait [#allocation5], 16  }
 0x138   :  { %323 = vsyncadd [#allocation5], 4294967280 }
 0x139   :  { %222 = sfence }
 0x13a   :  { %223 = vsyncpa [#allocation4], 1 }
 0x13b   :  { %224 = vsyncpa [#allocation7], 1 }
 0x13c   :  { %225 = vsyncpa [#allocation5], 1 }

</bundles_post_ra>
